<compile_context>
chip_gen: v7x
topology: tpu7x:2x2x1
jax: 0.10.0
libtpu: 0.0.40
codegen_flags: <defaults>
</compile_context>

<pallas_src>
import math

import jax
import jax.numpy as jnp
from jax.experimental import pallas as pl
from jax.experimental.pallas import tpu as pltpu

_TARGET_BLOCK_BYTES = 4 * 1024 * 1024   # per-input streaming block target
_MIN_STEPS_PER_CORE = 2                 # keep >=2 reduction steps per core so
                                        # the next block's DMA hides compute
_VMEM_LIMIT_BYTES = 32 * 1024 * 1024    # explicit guard: v5e default is 16 MiB
_NUM_CORES = 2                          # megacore split (v7x); harmless on 1 TC
_OUT_SUBLANES = 8                       # per-core output block is (8, 128)


def _cdiv(a, b):
    return -(-a // b)


def _as_3d(x):
    """View x as (B, R, W), keeping the minor two dims (layout-free reshape)."""
    if x.ndim == 0:
        return x.reshape(1, 1, 1)
    if x.ndim == 1:
        return x.reshape(1, 1, x.shape[0])
    if x.ndim == 2:
        return x.reshape(1, x.shape[0], x.shape[1])
    lead = math.prod(x.shape[:-2])
    return x.reshape(lead, x.shape[-2], x.shape[-1])


# ---------------------------------------------------------------------------
# Generic streaming sum-reduction kernel over a (B, R, W) view
# ---------------------------------------------------------------------------
def _make_reduce_kernel(elem_fn, n_inputs, total_rows, block_rows,
                        blocks_per_core):
    # Static: is any (core, step) block partial or past the end of the array?
    needs_mask = (_NUM_CORES * blocks_per_core * block_rows) != total_rows

    def kernel(*refs):
        in_refs = refs[:n_inputs]
        out_ref = refs[n_inputs]
        acc_ref = refs[n_inputs + 1]

        c = pl.program_id(0)   # core ("parallel") axis
        i = pl.program_id(1)   # reduction ("arbitrary") axis

        @pl.when(i == 0)
        def _init():
            acc_ref[...] = jnp.zeros_like(acc_ref)

        vals = elem_fn(*(r[...] for r in in_refs))   # f32 (block_rows, R, W)

        if needs_mask:
            logical_blk = c * blocks_per_core + i
            row0 = logical_blk * block_rows
            is_partial = row0 + block_rows > total_rows

            @pl.when(jnp.logical_not(is_partial))
            def _full():
                acc_ref[...] += jnp.sum(vals, axis=0, keepdims=True)

            @pl.when(is_partial)
            def _partial():
                # Lane SELECT against the logical row index: garbage (NaN/Inf)
                # in rows past the true end never reaches the accumulator.
                ridx = jax.lax.broadcasted_iota(jnp.int32, vals.shape, 0)
                keep = (row0 + ridx) < total_rows
                acc_ref[...] += jnp.sum(jnp.where(keep, vals, 0.0),
                                        axis=0, keepdims=True)
        else:
            acc_ref[...] += jnp.sum(vals, axis=0, keepdims=True)

        @pl.when(i == pl.num_programs(1) - 1)
        def _finalize():
            total = jnp.sum(acc_ref[...])            # one XLU reduce per core
            out_ref[...] = jnp.full(out_ref.shape, total, jnp.float32)

    return kernel


def _streamed_sum(elem_fn, *inputs):
    """sum(elem_fn(*inputs)) over all elements, computed in Pallas."""
    x3 = [_as_3d(x) for x in inputs]
    B, R, W = x3[0].shape
    for x in x3[1:]:
        assert x.shape == (B, R, W), "reduction inputs must share a shape"

    # Block rows: aim for ~_TARGET_BLOCK_BYTES per input, but leave at least
    # _MIN_STEPS_PER_CORE reduction steps per core for DMA/compute overlap.
    slice_bytes = R * W * max(x.dtype.itemsize for x in x3)
    bb = max(1, _TARGET_BLOCK_BYTES // slice_bytes)
    bb = min(bb, max(1, _cdiv(B, _NUM_CORES * _MIN_STEPS_PER_CORE)))

    total_blocks = _cdiv(B, bb)
    bpc = _cdiv(total_blocks, _NUM_CORES)            # blocks per core

    if _NUM_CORES * bpc == total_blocks:
        def in_map(c, i):
            return (c * bpc + i, 0, 0)
    else:
        # Some (core, step) pairs land past the last real block: clamp the
        # block index (always valid memory); the in-kernel row mask zeroes
        # their contribution.
        def in_map(c, i):
            return (jnp.minimum(c * bpc + i, total_blocks - 1), 0, 0)

    kernel = _make_reduce_kernel(elem_fn, len(x3), B, bb, bpc)

    out = pl.pallas_call(
        kernel,
        out_shape=jax.ShapeDtypeStruct((_NUM_CORES * _OUT_SUBLANES, 128),
                                       jnp.float32),
        grid_spec=pltpu.PrefetchScalarGridSpec(
            num_scalar_prefetch=0,
            grid=(_NUM_CORES, bpc),
            in_specs=[pl.BlockSpec((bb, R, W), in_map) for _ in x3],
            out_specs=pl.BlockSpec((_OUT_SUBLANES, 128),
                                   lambda c, i: (c, 0)),
            scratch_shapes=[pltpu.VMEM((1, R, W), jnp.float32)],
        ),
        compiler_params=pltpu.CompilerParams(
            dimension_semantics=("parallel", "arbitrary"),
            vmem_limit_bytes=_VMEM_LIMIT_BYTES,
        ),
    )(*x3)

    # One partial sum per core -> cheap scalar add in glue JAX.
    return out[0, 0] + out[_OUT_SUBLANES, 0]


def _sum_sq_diff(a, b):
    def sq_diff(av, bv):
        d = av.astype(jnp.float32) - bv.astype(jnp.float32)
        return d * d
    return _streamed_sum(sq_diff, a, b)


def _sum_log(x):
    return _streamed_sum(lambda v: jnp.log(v.astype(jnp.float32)), x)


# ---------------------------------------------------------------------------
# RateDistortionLoss.forward equivalent
# ---------------------------------------------------------------------------
def rate_distortion_loss(output, target, lmbda=0.01):
    """JAX/Pallas equivalent of RateDistortionLoss.forward.

    output: {'x_hat': (N,C,H,W) array, 'likelihoods': {name: array, ...}}
    target: (N,C,H,W) array
    """
    x_hat = output["x_hat"]
    N, _, H, W = target.shape
    num_pixels = N * H * W
    numel = math.prod(target.shape)

    # ---- MSE path: sum((x_hat - target)^2) in one Pallas reduction ----
    sq_sum = _sum_sq_diff(x_hat, target)
    mse_loss = sq_sum / jnp.float32(numel)

    # ---- bpp path: one log-sum pallas_call per likelihood (native shape) ----
    log_sum = jnp.float32(0.0)
    for lk in output["likelihoods"].values():
        log_sum = log_sum + _sum_log(lk)
    bpp_loss = log_sum / jnp.float32(-math.log(2) * num_pixels)

    loss = jnp.float32(lmbda * 255 ** 2) * mse_loss + bpp_loss
    return {"loss": loss, "mse_loss": mse_loss, "bpp_loss": bpp_loss}


# ---------------------------------------------------------------------------
# Demo / self-check
# ---------------------------------------------------------------------------
if __name__ == "__main__":
    key = jax.random.PRNGKey(0)
    k1, k2, k3, k4 = jax.random.split(key, 4)

    N, C, H, W = 2, 3, 16, 16
    target = jax.random.uniform(k1, (N, C, H, W), dtype=jnp.float32)
    x_hat = target + 0.05 * jax.random.normal(k2, (N, C, H, W),
                                              dtype=jnp.float32)

    # Likelihoods in (0, 1], as an entropy model would produce.
    lik_y = jax.random.uniform(k3, (2, 4, 4, 4), dtype=jnp.float32,
                               minval=0.05, maxval=1.0)
    lik_z = jax.random.uniform(k4, (2, 4, 2, 2), dtype=jnp.float32,
                               minval=0.05, maxval=1.0)

    output = {"x_hat": x_hat, "likelihoods": {"y": lik_y, "z": lik_z}}

    loss_fn = jax.jit(lambda o, t: rate_distortion_loss(o, t, lmbda=0.01))
    out = loss_fn(output, target)
    jax.block_until_ready(out["loss"])

    # Pure-JAX reference check (same math as the PyTorch module).
    num_pixels = N * H * W
    ref_bpp = (jnp.sum(jnp.log(lik_y)) + jnp.sum(jnp.log(lik_z))) / (
        -math.log(2) * num_pixels)
    ref_mse = jnp.mean((x_hat - target) ** 2)
    ref_loss = 0.01 * 255 ** 2 * ref_mse + ref_bpp

    assert jnp.allclose(out["bpp_loss"], ref_bpp, rtol=1e-5, atol=1e-5)
    assert jnp.allclose(out["mse_loss"], ref_mse, rtol=1e-5, atol=1e-6)
    assert jnp.allclose(out["loss"], ref_loss, rtol=1e-5, atol=1e-5)

    print("KERNEL_OK")
</pallas_src>

<mosaic_0001>
module attributes {stable_mosaic.version = 11 : i64} {
  func.func @kernel(%arg0: i32, %arg1: i32, %arg2: memref<2x2x2xf32, #tpu.memory_space<vmem>>, %arg3: memref<8x128xf32, #tpu.memory_space<vmem>>, %arg4: memref<1x2x2xf32, #tpu.memory_space<vmem>>) attributes {dimension_semantics = [#tpu.dimension_semantics<parallel>, #tpu.dimension_semantics<arbitrary>], iteration_bounds = array<i64: 2, 2>, scalar_prefetch = 0 : i64, scratch_operands = 1 : i64, tpu.core_type = #tpu.core_type<tc>, window_params = [{transform_indices = @transform_0, window_bounds = array<i64: 2, 2, 2>}, {transform_indices = @transform_1, window_bounds = array<i64: 8, 128>}]} {
    %c0_i32 = arith.constant 0 : i32
    %0 = arith.cmpi eq, %arg1, %c0_i32 : i32
    %1 = arith.extui %0 : i1 to i32
    %c0_i32_0 = arith.constant 0 : i32
    %2 = arith.cmpi ne, %1, %c0_i32_0 : i32
    scf.if %2 {
      %cst_10 = arith.constant 0.000000e+00 : f32
      %13 = vector.broadcast %cst_10 : f32 to vector<1x2x2xf32>
      %c0_11 = arith.constant 0 : index
      %c0_12 = arith.constant 0 : index
      %c0_13 = arith.constant 0 : index
      %14 = vector.load %arg4[%c0_11, %c0_12, %c0_13] : memref<1x2x2xf32, #tpu.memory_space<vmem>>, vector<1x2x2xf32>
      tpu.vector_store %arg4[%c0_11, %c0_12, %c0_13], %13 {strides = array<i32>} : memref<1x2x2xf32, #tpu.memory_space<vmem>>, vector<1x2x2xf32>,
    } else {
    }
    %c0 = arith.constant 0 : index
    %c0_1 = arith.constant 0 : index
    %c0_2 = arith.constant 0 : index
    %3 = vector.load %arg2[%c0, %c0_1, %c0_2] : memref<2x2x2xf32, #tpu.memory_space<vmem>>, vector<2x2x2xf32>
    %4 = math.log %3 : vector<2x2x2xf32>
    %c0_3 = arith.constant 0 : index
    %c0_4 = arith.constant 0 : index
    %c0_5 = arith.constant 0 : index
    %5 = vector.load %arg4[%c0_3, %c0_4, %c0_5] : memref<1x2x2xf32, #tpu.memory_space<vmem>>, vector<1x2x2xf32>
    %cst = arith.constant dense<0.000000e+00> : vector<2x2xf32>
    %6 = vector.multi_reduction <add>, %4, %cst [0] : vector<2x2x2xf32> to vector<2x2xf32>
    %7 = vector.shape_cast %6 : vector<2x2xf32> to vector<1x2x2xf32>
    %8 = arith.addf %5, %7 : vector<1x2x2xf32>
    %c0_6 = arith.constant 0 : index
    %c0_7 = arith.constant 0 : index
    %c0_8 = arith.constant 0 : index
    %9 = vector.load %arg4[%c0_6, %c0_7, %c0_8] : memref<1x2x2xf32, #tpu.memory_space<vmem>>, vector<1x2x2xf32>
    tpu.vector_store %arg4[%c0_6, %c0_7, %c0_8], %8 {strides = array<i32>} : memref<1x2x2xf32, #tpu.memory_space<vmem>>, vector<1x2x2xf32>,
    %c1_i32 = arith.constant 1 : i32
    %10 = arith.cmpi eq, %arg1, %c1_i32 : i32
    %11 = arith.extui %10 : i1 to i32
    %c0_i32_9 = arith.constant 0 : i32
    %12 = arith.cmpi ne, %11, %c0_i32_9 : i32
    scf.if %12 {
      %c0_10 = arith.constant 0 : index
      %c0_11 = arith.constant 0 : index
      %c0_12 = arith.constant 0 : index
      %13 = vector.load %arg4[%c0_10, %c0_11, %c0_12] : memref<1x2x2xf32, #tpu.memory_space<vmem>>, vector<1x2x2xf32>
      %14 = vector.shape_cast %13 : vector<1x2x2xf32> to vector<1x1x2x2xf32>
      %cst_13 = arith.constant dense<0.000000e+00> : vector<1xf32>
      %15 = vector.multi_reduction <add>, %14, %cst_13 [1, 2, 3] : vector<1x1x2x2xf32> to vector<1xf32>
      %16 = vector.shape_cast %15 : vector<1xf32> to vector<1x1x1x1xf32>
      %17 = vector.extract %16[0, 0, 0, 0] : f32 from vector<1x1x1x1xf32>
      %18 = vector.broadcast %17 : f32 to vector<8x128xf32>
      %c0_14 = arith.constant 0 : index
      %c0_15 = arith.constant 0 : index
      %19 = vector.load %arg3[%c0_14, %c0_15] : memref<8x128xf32, #tpu.memory_space<vmem>>, vector<8x128xf32>
      tpu.vector_store %arg3[%c0_14, %c0_15], %18 {strides = array<i32>} : memref<8x128xf32, #tpu.memory_space<vmem>>, vector<8x128xf32>,
    } else {
    }
    return
  }
  func.func @transform_0(%arg0: i32, %arg1: i32) -> (i32, i32, i32) {
    %c2_i32 = arith.constant 2 : i32
    %0 = arith.muli %arg0, %c2_i32 : i32
    %1 = arith.addi %0, %arg1 : i32
    %c0_i32 = arith.constant 0 : i32
    %c0_i32_0 = arith.constant 0 : i32
    %c0_i32_1 = arith.constant 0 : i32
    return %1, %c0_i32, %c0_i32_0 : i32, i32, i32
  }
  func.func @transform_1(%arg0: i32, %arg1: i32) -> (i32, i32) {
    %c0_i32 = arith.constant 0 : i32
    %c0_i32_0 = arith.constant 0 : i32
    return %arg0, %c0_i32 : i32, i32
  }
}

module attributes {stable_mosaic.version = 11 : i64} {
  func.func @kernel(%arg0: i32, %arg1: i32, %arg2: memref<2x4x4xf32, #tpu.memory_space<vmem>>, %arg3: memref<8x128xf32, #tpu.memory_space<vmem>>, %arg4: memref<1x4x4xf32, #tpu.memory_space<vmem>>) attributes {dimension_semantics = [#tpu.dimension_semantics<parallel>, #tpu.dimension_semantics<arbitrary>], iteration_bounds = array<i64: 2, 2>, scalar_prefetch = 0 : i64, scratch_operands = 1 : i64, tpu.core_type = #tpu.core_type<tc>, window_params = [{transform_indices = @transform_0, window_bounds = array<i64: 2, 4, 4>}, {transform_indices = @transform_1, window_bounds = array<i64: 8, 128>}]} {
    %c0_i32 = arith.constant 0 : i32
    %0 = arith.cmpi eq, %arg1, %c0_i32 : i32
    %1 = arith.extui %0 : i1 to i32
    %c0_i32_0 = arith.constant 0 : i32
    %2 = arith.cmpi ne, %1, %c0_i32_0 : i32
    scf.if %2 {
      %cst_10 = arith.constant 0.000000e+00 : f32
      %13 = vector.broadcast %cst_10 : f32 to vector<1x4x4xf32>
      %c0_11 = arith.constant 0 : index
      %c0_12 = arith.constant 0 : index
      %c0_13 = arith.constant 0 : index
      %14 = vector.load %arg4[%c0_11, %c0_12, %c0_13] : memref<1x4x4xf32, #tpu.memory_space<vmem>>, vector<1x4x4xf32>
      tpu.vector_store %arg4[%c0_11, %c0_12, %c0_13], %13 {strides = array<i32>} : memref<1x4x4xf32, #tpu.memory_space<vmem>>, vector<1x4x4xf32>,
    } else {
    }
    %c0 = arith.constant 0 : index
    %c0_1 = arith.constant 0 : index
    %c0_2 = arith.constant 0 : index
    %3 = vector.load %arg2[%c0, %c0_1, %c0_2] : memref<2x4x4xf32, #tpu.memory_space<vmem>>, vector<2x4x4xf32>
    %4 = math.log %3 : vector<2x4x4xf32>
    %c0_3 = arith.constant 0 : index
    %c0_4 = arith.constant 0 : index
    %c0_5 = arith.constant 0 : index
    %5 = vector.load %arg4[%c0_3, %c0_4, %c0_5] : memref<1x4x4xf32, #tpu.memory_space<vmem>>, vector<1x4x4xf32>
    %cst = arith.constant dense<0.000000e+00> : vector<4x4xf32>
    %6 = vector.multi_reduction <add>, %4, %cst [0] : vector<2x4x4xf32> to vector<4x4xf32>
    %7 = vector.shape_cast %6 : vector<4x4xf32> to vector<1x4x4xf32>
    %8 = arith.addf %5, %7 : vector<1x4x4xf32>
    %c0_6 = arith.constant 0 : index
    %c0_7 = arith.constant 0 : index
    %c0_8 = arith.constant 0 : index
    %9 = vector.load %arg4[%c0_6, %c0_7, %c0_8] : memref<1x4x4xf32, #tpu.memory_space<vmem>>, vector<1x4x4xf32>
    tpu.vector_store %arg4[%c0_6, %c0_7, %c0_8], %8 {strides = array<i32>} : memref<1x4x4xf32, #tpu.memory_space<vmem>>, vector<1x4x4xf32>,
    %c1_i32 = arith.constant 1 : i32
    %10 = arith.cmpi eq, %arg1, %c1_i32 : i32
    %11 = arith.extui %10 : i1 to i32
    %c0_i32_9 = arith.constant 0 : i32
    %12 = arith.cmpi ne, %11, %c0_i32_9 : i32
    scf.if %12 {
      %c0_10 = arith.constant 0 : index
      %c0_11 = arith.constant 0 : index
      %c0_12 = arith.constant 0 : index
      %13 = vector.load %arg4[%c0_10, %c0_11, %c0_12] : memref<1x4x4xf32, #tpu.memory_space<vmem>>, vector<1x4x4xf32>
      %14 = vector.shape_cast %13 : vector<1x4x4xf32> to vector<1x1x4x4xf32>
      %cst_13 = arith.constant dense<0.000000e+00> : vector<1xf32>
      %15 = vector.multi_reduction <add>, %14, %cst_13 [1, 2, 3] : vector<1x1x4x4xf32> to vector<1xf32>
      %16 = vector.shape_cast %15 : vector<1xf32> to vector<1x1x1x1xf32>
      %17 = vector.extract %16[0, 0, 0, 0] : f32 from vector<1x1x1x1xf32>
      %18 = vector.broadcast %17 : f32 to vector<8x128xf32>
      %c0_14 = arith.constant 0 : index
      %c0_15 = arith.constant 0 : index
      %19 = vector.load %arg3[%c0_14, %c0_15] : memref<8x128xf32, #tpu.memory_space<vmem>>, vector<8x128xf32>
      tpu.vector_store %arg3[%c0_14, %c0_15], %18 {strides = array<i32>} : memref<8x128xf32, #tpu.memory_space<vmem>>, vector<8x128xf32>,
    } else {
    }
    return
  }
  func.func @transform_0(%arg0: i32, %arg1: i32) -> (i32, i32, i32) {
    %c2_i32 = arith.constant 2 : i32
    %0 = arith.muli %arg0, %c2_i32 : i32
    %1 = arith.addi %0, %arg1 : i32
    %c0_i32 = arith.constant 0 : i32
    %c0_i32_0 = arith.constant 0 : i32
    %c0_i32_1 = arith.constant 0 : i32
    return %1, %c0_i32, %c0_i32_0 : i32, i32, i32
  }
  func.func @transform_1(%arg0: i32, %arg1: i32) -> (i32, i32) {
    %c0_i32 = arith.constant 0 : i32
    %c0_i32_0 = arith.constant 0 : i32
    return %arg0, %c0_i32 : i32, i32
  }
}

module attributes {stable_mosaic.version = 11 : i64} {
  func.func @kernel(%arg0: i32, %arg1: i32, %arg2: memref<2x16x16xf32, #tpu.memory_space<vmem>>, %arg3: memref<2x16x16xf32, #tpu.memory_space<vmem>>, %arg4: memref<8x128xf32, #tpu.memory_space<vmem>>, %arg5: memref<1x16x16xf32, #tpu.memory_space<vmem>>) attributes {dimension_semantics = [#tpu.dimension_semantics<parallel>, #tpu.dimension_semantics<arbitrary>], iteration_bounds = array<i64: 2, 2>, scalar_prefetch = 0 : i64, scratch_operands = 1 : i64, tpu.core_type = #tpu.core_type<tc>, window_params = [{transform_indices = @transform_0, window_bounds = array<i64: 2, 16, 16>}, {transform_indices = @transform_1, window_bounds = array<i64: 2, 16, 16>}, {transform_indices = @transform_2, window_bounds = array<i64: 8, 128>}]} {
    %c0_i32 = arith.constant 0 : i32
    %0 = arith.cmpi eq, %arg1, %c0_i32 : i32
    %1 = arith.extui %0 : i1 to i32
    %c0_i32_0 = arith.constant 0 : i32
    %2 = arith.cmpi ne, %1, %c0_i32_0 : i32
    scf.if %2 {
      %cst = arith.constant 0.000000e+00 : f32
      %20 = vector.broadcast %cst : f32 to vector<1x16x16xf32>
      %c0_11 = arith.constant 0 : index
      %c0_12 = arith.constant 0 : index
      %c0_13 = arith.constant 0 : index
      %21 = vector.load %arg5[%c0_11, %c0_12, %c0_13] : memref<1x16x16xf32, #tpu.memory_space<vmem>>, vector<1x16x16xf32>
      tpu.vector_store %arg5[%c0_11, %c0_12, %c0_13], %20 {strides = array<i32>} : memref<1x16x16xf32, #tpu.memory_space<vmem>>, vector<1x16x16xf32>,
    } else {
    }
    %c0 = arith.constant 0 : index
    %c0_1 = arith.constant 0 : index
    %c0_2 = arith.constant 0 : index
    %3 = vector.load %arg2[%c0, %c0_1, %c0_2] : memref<2x16x16xf32, #tpu.memory_space<vmem>>, vector<2x16x16xf32>
    %c0_3 = arith.constant 0 : index
    %c0_4 = arith.constant 0 : index
    %c0_5 = arith.constant 0 : index
    %4 = vector.load %arg3[%c0_3, %c0_4, %c0_5] : memref<2x16x16xf32, #tpu.memory_space<vmem>>, vector<2x16x16xf32>
    %5 = arith.subf %3, %4 : vector<2x16x16xf32>
    %6 = arith.mulf %5, %5 : vector<2x16x16xf32>
    %c2_i32 = arith.constant 2 : i32
    %7 = arith.muli %arg0, %c2_i32 : i32
    %8 = arith.addi %7, %arg1 : i32
    %c2_i32_6 = arith.constant 2 : i32
    %9 = arith.muli %8, %c2_i32_6 : i32
    %c2_i32_7 = arith.constant 2 : i32
    %10 = arith.addi %9, %c2_i32_7 : i32
    %c6_i32 = arith.constant 6 : i32
    %11 = arith.cmpi sgt, %10, %c6_i32 : i32
    %true = arith.constant true
    %12 = arith.xori %11, %true : i1
    %13 = arith.extui %12 : i1 to i32
    %c0_i32_8 = arith.constant 0 : i32
    %14 = arith.cmpi ne, %13, %c0_i32_8 : i32
    scf.if %14 {
      %c0_11 = arith.constant 0 : index
      %c0_12 = arith.constant 0 : index
      %c0_13 = arith.constant 0 : index
      %20 = vector.load %arg5[%c0_11, %c0_12, %c0_13] : memref<1x16x16xf32, #tpu.memory_space<vmem>>, vector<1x16x16xf32>
      %cst = arith.constant dense<0.000000e+00> : vector<16x16xf32>
      %21 = vector.multi_reduction <add>, %6, %cst [0] : vector<2x16x16xf32> to vector<16x16xf32>
      %22 = vector.shape_cast %21 : vector<16x16xf32> to vector<1x16x16xf32>
      %23 = arith.addf %20, %22 : vector<1x16x16xf32>
      %c0_14 = arith.constant 0 : index
      %c0_15 = arith.constant 0 : index
      %c0_16 = arith.constant 0 : index
      %24 = vector.load %arg5[%c0_14, %c0_15, %c0_16] : memref<1x16x16xf32, #tpu.memory_space<vmem>>, vector<1x16x16xf32>
      tpu.vector_store %arg5[%c0_14, %c0_15, %c0_16], %23 {strides = array<i32>} : memref<1x16x16xf32, #tpu.memory_space<vmem>>, vector<1x16x16xf32>,
    } else {
    }
    %15 = arith.extui %11 : i1 to i32
    %c0_i32_9 = arith.constant 0 : i32
    %16 = arith.cmpi ne, %15, %c0_i32_9 : i32
    scf.if %16 {
      %20 = tpu.iota {dimensions = array<i32: 0>} : vector<2x16x16xi32>
      %21 = vector.broadcast %9 : i32 to vector<2x16x16xi32>
      %22 = arith.addi %21, %20 : vector<2x16x16xi32>
      %c6_i32_11 = arith.constant 6 : i32
      %23 = vector.broadcast %c6_i32_11 : i32 to vector<2x16x16xi32>
      %24 = arith.cmpi slt, %22, %23 : vector<2x16x16xi32>
      %c0_12 = arith.constant 0 : index
      %c0_13 = arith.constant 0 : index
      %c0_14 = arith.constant 0 : index
      %25 = vector.load %arg5[%c0_12, %c0_13, %c0_14] : memref<1x16x16xf32, #tpu.memory_space<vmem>>, vector<1x16x16xf32>
      %cst = arith.constant 0.000000e+00 : f32
      %26 = vector.broadcast %cst : f32 to vector<2x16x16xf32>
      %27 = arith.select %24, %6, %26 : vector<2x16x16xi1>, vector<2x16x16xf32>
      %cst_15 = arith.constant dense<0.000000e+00> : vector<16x16xf32>
      %28 = vector.multi_reduction <add>, %27, %cst_15 [0] : vector<2x16x16xf32> to vector<16x16xf32>
      %29 = vector.shape_cast %28 : vector<16x16xf32> to vector<1x16x16xf32>
      %30 = arith.addf %25, %29 : vector<1x16x16xf32>
      %c0_16 = arith.constant 0 : index
      %c0_17 = arith.constant 0 : index
      %c0_18 = arith.constant 0 : index
      %31 = vector.load %arg5[%c0_16, %c0_17, %c0_18] : memref<1x16x16xf32, #tpu.memory_space<vmem>>, vector<1x16x16xf32>
      tpu.vector_store %arg5[%c0_16, %c0_17, %c0_18], %30 {strides = array<i32>} : memref<1x16x16xf32, #tpu.memory_space<vmem>>, vector<1x16x16xf32>,
    } else {
    }
    %c1_i32 = arith.constant 1 : i32
    %17 = arith.cmpi eq, %arg1, %c1_i32 : i32
    %18 = arith.extui %17 : i1 to i32
    %c0_i32_10 = arith.constant 0 : i32
    %19 = arith.cmpi ne, %18, %c0_i32_10 : i32
    scf.if %19 {
      %c0_11 = arith.constant 0 : index
      %c0_12 = arith.constant 0 : index
      %c0_13 = arith.constant 0 : index
      %20 = vector.load %arg5[%c0_11, %c0_12, %c0_13] : memref<1x16x16xf32, #tpu.memory_space<vmem>>, vector<1x16x16xf32>
      %21 = vector.shape_cast %20 : vector<1x16x16xf32> to vector<1x1x16x16xf32>
      %cst = arith.constant dense<0.000000e+00> : vector<1xf32>
      %22 = vector.multi_reduction <add>, %21, %cst [1, 2, 3] : vector<1x1x16x16xf32> to vector<1xf32>
      %23 = vector.shape_cast %22 : vector<1xf32> to vector<1x1x1x1xf32>
      %24 = vector.extract %23[0, 0, 0, 0] : f32 from vector<1x1x1x1xf32>
      %25 = vector.broadcast %24 : f32 to vector<8x128xf32>
      %c0_14 = arith.constant 0 : index
      %c0_15 = arith.constant 0 : index
      %26 = vector.load %arg4[%c0_14, %c0_15] : memref<8x128xf32, #tpu.memory_space<vmem>>, vector<8x128xf32>
      tpu.vector_store %arg4[%c0_14, %c0_15], %25 {strides = array<i32>} : memref<8x128xf32, #tpu.memory_space<vmem>>, vector<8x128xf32>,
    } else {
    }
    return
  }
  func.func @transform_0(%arg0: i32, %arg1: i32) -> (i32, i32, i32) {
    %c2_i32 = arith.constant 2 : i32
    %0 = arith.muli %arg0, %c2_i32 : i32
    %1 = arith.addi %0, %arg1 : i32
    %c2_i32_0 = arith.constant 2 : i32
    %2 = arith.minsi %1, %c2_i32_0 : i32
    %c0_i32 = arith.constant 0 : i32
    %c0_i32_1 = arith.constant 0 : i32
    %c0_i32_2 = arith.constant 0 : i32
    return %2, %c0_i32, %c0_i32_1 : i32, i32, i32
  }
  func.func @transform_1(%arg0: i32, %arg1: i32) -> (i32, i32, i32) {
    %c2_i32 = arith.constant 2 : i32
    %0 = arith.muli %arg0, %c2_i32 : i32
    %1 = arith.addi %0, %arg1 : i32
    %c2_i32_0 = arith.constant 2 : i32
    %2 = arith.minsi %1, %c2_i32_0 : i32
    %c0_i32 = arith.constant 0 : i32
    %c0_i32_1 = arith.constant 0 : i32
    %c0_i32_2 = arith.constant 0 : i32
    return %2, %c0_i32, %c0_i32_1 : i32, i32, i32
  }
  func.func @transform_2(%arg0: i32, %arg1: i32) -> (i32, i32) {
    %c0_i32 = arith.constant 0 : i32
    %c0_i32_0 = arith.constant 0 : i32
    return %arg0, %c0_i32 : i32, i32
  }
}

</mosaic_0001>

<bundles_post_ra>
// kernel: _lambda_.5
= control target key start
LH: loop header
LB: loop body
LE: loop exit
PB: predicated region body
PF: predicated region fallthrough
CT: control target
= control target key end

     0   :  { %s356_s6 = smov 0   ;;  %s358_s7 = smov 0   ;;  %s415_s0 = inlined_call_operand.vmem [shape: f32[8,2,2], index: 0, kind: input, shape index: {}]   ;;  %s416_s1 = inlined_call_operand.vmem [shape: f32[16,128], index: 1, kind: output, shape index: {}]  }
   0x1   :  { %s360_s8 = smov 0   ;;  %s362_s9 = smov 0  }
   0x2   :  { %s364_s10 = smov 0  }
   0x3 LB: > { %s20_s11 = sadd.s32 1, %s335_s8  ;;  %s23_s12 = sadd.s32 1, %s339_s9  ;;  %s343_s10 = sphi %s364_s10, %s11_s10   ;;  %s339_s9 = sphi %s362_s9, %s420_s9   ;;  %s335_s8 = sphi %s360_s8, %s419_s8   ;;  %s331_s7 = sphi %s358_s7, %s418_s7   ;;  %s327_s6 = sphi %s356_s6, %s417_s6  }
   0x4   : > { %p21_p0 = scmp.ge.s32.totalorder %s20_s11, 2  ;;  %p249_p1 = scmp.ge.s32.totalorder %s343_s10, 1 }
   0x5   : > { %p108_p2 = scmp.lt.s32.totalorder %s343_s10, 5 }
   0x6   : > { %s422_s11 = smov (%p21_p0, %s20_s11), 0  ;;  %s424_s12 = smov (!%p21_p0, %s23_s12), %s339_s9 }
   0x7   : > { %p109_p3 = pnand %p249_p1, %p108_p2  ;;  %p25_p4 = scmp.ge.s32.totalorder %s424_s12, 2 }
   0x8   : > { %s250_s13 = sshll.u32 (!%p109_p3), %s331_s7, 1  ;;  %p139_p5 = scmp.lt.s32.totalorder (!%p109_p3), %s331_s7, 1 }
   0x9   : > { %s426_s12 = smov (%p25_p4, %s424_s12), 0  ;;  %112 = sbr.rel (%p109_p3) target bundleno = 261 (0x105), region = 24 }
   0xa   : > { %s130_s14 = sadd.s32 (!%p109_p3), %s327_s6, %s250_s13  ;;  %p254_p7 = scmp.ne.s32.totalorder (!%p109_p3), %s327_s6, 0 }
   0xb   : > { %s251_s15 = sshll.u32 (!%p109_p3), %s130_s14, 1 }
   0xc   : > { %p132_p6 = scmp.lt.s32.totalorder (!%p109_p3), %s251_s15, 7 }
  0x10   : > { %s428_s7 = smov (!%p139_p5, %s331_s7), 1  ;;  %s430_s15 = smov (!%p132_p6, %s251_s15), 7 }
  0x11   : > { %s253_s16 = sshll.u32 %s428_s7, 3  ;;  %s252_s17 = sshll.u32 %s430_s15, 1  ;;  %vm147_vm0 = vcmask (!%p254_p7), 9216   ;;  %v345_v0 = vmov (!%p254_p7), 0.0  }
  0x12   : > { %s392_s20 = scalar_lea.vmem %s416_s1, %s253_s16  ;;  %s135_s23 = scalar_lea.vmem %s415_s0, %s252_s17  ;;  %148 = vst.msk [vmem:[#allocation2] sm:$0x3] (!%p254_p7), %vm147_vm0, %v345_v0 }
  0x13   : > { %146 = sbr.rel (%p254_p7) target bundleno = 26 (0x1a), region = 28 }
  0x1a PF: > { %v149_v1 = vld [vmem:[%s135_s23] sm:$0x3]  ;;  %v150_v2 = vld [vmem:[%s135_s23 + $0x2] sm:$0x3]  ;;  %vm156_vm1 = vcmask 9216   ;;  %p255_p8 = scmp.ne.s32.totalorder %s327_s6, 1 }
  0x1b   : > { %301 = vlog2.f32 %v149_v1  ;;  %v155_v8 = vld [vmem:[#allocation2] sm:$0x3] }
  0x1c   : > { %303 = vlog2.f32 %v150_v2 }
  0x25   : > { %v302_v3 = vpop.eup %301 }
  0x26   : > { %v304_v4 = vpop.eup %303  ;;  %v152_v5 = vmul.f32 0.6931472, %v302_v3 }
  0x27   : > { %v154_v6 = vmul.f32 0.6931472, %v304_v4 }
  0x28   : > { %v157_v7 = vsel %vm156_vm1, %v152_v5, 0.0  ;;  %165 = sbr.rel (%p255_p8) target bundleno = 261 (0x105), region = 32 }
  0x29   : > { %v158_v9 = vsel %vm156_vm1, %v154_v6, 0.0 }
  0x2a   : > { %v159_v10 = vadd.f32 %v158_v9, %v157_v7 }
  0x2c   : > { %v160_v11 = vadd.f32 %v159_v10, %v155_v8 }
  0x2e   : > { %161 = vst.msk [vmem:[#allocation2] sm:$0x3] %vm156_vm1, %v160_v11 }
  0x35   : > { %v166_v12 = vld [vmem:[#allocation2] sm:$0x3] }
  0x36   : > { %v167_v13 = vsel %vm156_vm1, %v166_v12, 0.0 }
  0x37   : > { %168 = vadd.xlane.f32.xlu0 %v167_v13 }
  0xc4   : > { %v169_v14 = vpop.xlane.xlu0 %168 }
  0xc5   : > { %v170_v15 = vrot.slane %v169_v14, 4 }
  0xc7   : > { %v171_v16 = vadd.f32 %v170_v15, %v169_v14 }
  0xc9   : > { %v172_v17 = vrot.slane %v171_v16, 2 }
  0xcb   : > { %v173_v18 = vadd.f32 %v172_v17, %v171_v16 }
  0xcd   : > { %v174_v19 = vrot.slane %v173_v18, 1 }
  0xcf   : > { %v175_v20 = vadd.f32 %v174_v19, %v173_v18 }
  0xd1   : > { %258 = vpush %v175_v20 }
 0x102   : > { %s259_s24 = spop %258 }
 0x103   : > { %v177_v21 = vstv %s259_s24 }
 0x104   : > { %178 = vst [vmem:[%s392_s20] sm:$0xff] %v177_v21 }
 0x105 PF: > { %s11_s10 = sadd.s32 1, %s343_s10   ;;  %s417_s6 = smov %s335_s8 }
 0x106   : > { %p8_p9 = scmp.ge.s32.totalorder %s11_s10, 6   ;;  %s418_s7 = smov %s339_s9 }
 0x107   : > { %s419_s8 = smov %s422_s11  ;;  %s420_s9 = smov %s426_s12 }
 0x108   :  { %10 = sbr.rel (!%p8_p9) target bundleno = 3 (0x3), region = 62 }

// kernel: _lambda_.4
= control target key start
LH: loop header
LB: loop body
LE: loop exit
PB: predicated region body
PF: predicated region fallthrough
CT: control target
= control target key end

     0   :  { %s356_s6 = smov 0   ;;  %s358_s7 = smov 0   ;;  %s415_s0 = inlined_call_operand.vmem [shape: f32[8,4,4], index: 0, kind: input, shape index: {}]   ;;  %s416_s1 = inlined_call_operand.vmem [shape: f32[16,128], index: 1, kind: output, shape index: {}]  }
   0x1   :  { %s360_s8 = smov 0   ;;  %s362_s9 = smov 0  }
   0x2   :  { %s364_s10 = smov 0  }
   0x3 LB: > { %s20_s11 = sadd.s32 1, %s335_s8  ;;  %s23_s12 = sadd.s32 1, %s339_s9  ;;  %s343_s10 = sphi %s364_s10, %s11_s10   ;;  %s339_s9 = sphi %s362_s9, %s420_s9   ;;  %s335_s8 = sphi %s360_s8, %s419_s8   ;;  %s331_s7 = sphi %s358_s7, %s418_s7   ;;  %s327_s6 = sphi %s356_s6, %s417_s6  }
   0x4   : > { %p21_p0 = scmp.ge.s32.totalorder %s20_s11, 2  ;;  %p249_p1 = scmp.ge.s32.totalorder %s343_s10, 1 }
   0x5   : > { %p108_p2 = scmp.lt.s32.totalorder %s343_s10, 5 }
   0x6   : > { %s422_s11 = smov (%p21_p0, %s20_s11), 0  ;;  %s424_s12 = smov (!%p21_p0, %s23_s12), %s339_s9 }
   0x7   : > { %p109_p3 = pnand %p249_p1, %p108_p2  ;;  %p25_p4 = scmp.ge.s32.totalorder %s424_s12, 2 }
   0x8   : > { %s250_s13 = sshll.u32 (!%p109_p3), %s331_s7, 1  ;;  %p139_p5 = scmp.lt.s32.totalorder (!%p109_p3), %s331_s7, 1 }
   0x9   : > { %s426_s12 = smov (%p25_p4, %s424_s12), 0  ;;  %112 = sbr.rel (%p109_p3) target bundleno = 261 (0x105), region = 24 }
   0xa   : > { %s130_s14 = sadd.s32 (!%p109_p3), %s327_s6, %s250_s13  ;;  %p254_p7 = scmp.ne.s32.totalorder (!%p109_p3), %s327_s6, 0 }
   0xb   : > { %s251_s15 = sshll.u32 (!%p109_p3), %s130_s14, 1 }
   0xc   : > { %p132_p6 = scmp.lt.s32.totalorder (!%p109_p3), %s251_s15, 7 }
  0x10   : > { %s428_s7 = smov (!%p139_p5, %s331_s7), 1  ;;  %s430_s15 = smov (!%p132_p6, %s251_s15), 7 }
  0x11   : > { %s253_s16 = sshll.u32 %s428_s7, 3  ;;  %s252_s17 = sshll.u32 %s430_s15, 2  ;;  %vm147_vm0 = vcmask (!%p254_p7), 27648   ;;  %v345_v0 = vmov (!%p254_p7), 0.0  }
  0x12   : > { %s392_s20 = scalar_lea.vmem %s416_s1, %s253_s16  ;;  %s135_s23 = scalar_lea.vmem %s415_s0, %s252_s17  ;;  %148 = vst.msk [vmem:[#allocation2] sm:$0xf] (!%p254_p7), %vm147_vm0, %v345_v0 }
  0x13   : > { %146 = sbr.rel (%p254_p7) target bundleno = 26 (0x1a), region = 28 }
  0x1a PF: > { %v149_v1 = vld [vmem:[%s135_s23] sm:$0xf]  ;;  %v150_v2 = vld [vmem:[%s135_s23 + $0x4] sm:$0xf]  ;;  %vm156_vm1 = vcmask 27648   ;;  %p255_p8 = scmp.ne.s32.totalorder %s327_s6, 1 }
  0x1b   : > { %301 = vlog2.f32 %v149_v1  ;;  %v155_v8 = vld [vmem:[#allocation2] sm:$0xf] }
  0x1c   : > { %303 = vlog2.f32 %v150_v2 }
  0x25   : > { %v302_v3 = vpop.eup %301 }
  0x26   : > { %v304_v4 = vpop.eup %303  ;;  %v152_v5 = vmul.f32 0.6931472, %v302_v3 }
  0x27   : > { %v154_v6 = vmul.f32 0.6931472, %v304_v4 }
  0x28   : > { %v157_v7 = vsel %vm156_vm1, %v152_v5, 0.0  ;;  %165 = sbr.rel (%p255_p8) target bundleno = 261 (0x105), region = 32 }
  0x29   : > { %v158_v9 = vsel %vm156_vm1, %v154_v6, 0.0 }
  0x2a   : > { %v159_v10 = vadd.f32 %v158_v9, %v157_v7 }
  0x2c   : > { %v160_v11 = vadd.f32 %v159_v10, %v155_v8 }
  0x2e   : > { %161 = vst.msk [vmem:[#allocation2] sm:$0xf] %vm156_vm1, %v160_v11 }
  0x35   : > { %v166_v12 = vld [vmem:[#allocation2] sm:$0xf] }
  0x36   : > { %v167_v13 = vsel %vm156_vm1, %v166_v12, 0.0 }
  0x37   : > { %168 = vadd.xlane.f32.xlu0 %v167_v13 }
  0xc4   : > { %v169_v14 = vpop.xlane.xlu0 %168 }
  0xc5   : > { %v170_v15 = vrot.slane %v169_v14, 4 }
  0xc7   : > { %v171_v16 = vadd.f32 %v170_v15, %v169_v14 }
  0xc9   : > { %v172_v17 = vrot.slane %v171_v16, 2 }
  0xcb   : > { %v173_v18 = vadd.f32 %v172_v17, %v171_v16 }
  0xcd   : > { %v174_v19 = vrot.slane %v173_v18, 1 }
  0xcf   : > { %v175_v20 = vadd.f32 %v174_v19, %v173_v18 }
  0xd1   : > { %258 = vpush %v175_v20 }
 0x102   : > { %s259_s24 = spop %258 }
 0x103   : > { %v177_v21 = vstv %s259_s24 }
 0x104   : > { %178 = vst [vmem:[%s392_s20] sm:$0xff] %v177_v21 }
 0x105 PF: > { %s11_s10 = sadd.s32 1, %s343_s10   ;;  %s417_s6 = smov %s335_s8 }
 0x106   : > { %p8_p9 = scmp.ge.s32.totalorder %s11_s10, 6   ;;  %s418_s7 = smov %s339_s9 }
 0x107   : > { %s419_s8 = smov %s422_s11  ;;  %s420_s9 = smov %s426_s12 }
 0x108   :  { %10 = sbr.rel (!%p8_p9) target bundleno = 3 (0x3), region = 62 }

// kernel: _lambda_.3
= control target key start
LH: loop header
LB: loop body
LE: loop exit
PB: predicated region body
PF: predicated region fallthrough
CT: control target
= control target key end

     0   :  { %7 = vsyncpa [#allocation4], 0  ;;  %s823_s0 = inlined_call_operand.vmem [shape: f32[6,16,16], index: 0, kind: input, shape index: {}]   ;;  %s824_s1 = inlined_call_operand.hbm [shape: f32[6,16,16], index: 1, kind: input, shape index: {}]   ;;  %s825_s2 = inlined_call_operand.vmem [shape: f32[16,128], index: 2, kind: output, shape index: {}]  }
   0x1   :  { %9 = vsyncpa [#allocation4 + $0x1], 0  ;;  %s647_s9 = smov 0   ;;  %s649_s10 = smov 0  }
   0x2   :  { %s651_s11 = smov 0   ;;  %s653_s12 = smov 0  }
   0x3   :  { %s655_s13 = smov 0   ;;  %s657_s14 = smov 0  }
   0x4   :  { %s659_s15 = smov 0   ;;  %s661_s16 = smov 0  }
   0x5 LB: > { %s423_s17 = sadd.s32 4294967295, %s626_s16   ;;  %s24_s18 = sadd.s32 1, %s618_s14  ;;  %s626_s16 = sphi %s661_s16, %s15_s16   ;;  %s622_s15 = sphi %s659_s15, %s835_s15   ;;  %s618_s14 = sphi %s657_s14, %s834_s14   ;;  %s614_s13 = sphi %s655_s13, %s833_s13   ;;  %s610_s12 = sphi %s653_s12, %s832_s12   ;;  %s606_s11 = sphi %s651_s11, %s831_s11   ;;  %s602_s10 = sphi %s649_s10, %s830_s10   ;;  %s598_s9 = sphi %s647_s9, %s829_s9  }
   0x6   : > { %p25_p0 = scmp.ge.s32.totalorder %s24_s18, 2  ;;  %s27_s19 = sadd.s32 1, %s622_s15 }
   0x7   : > { %s427_s20 = sshll.u32 %s622_s15, 1  ;;  %s76_s21 = sadd.s32 1, %s606_s11 }
   0x8   : > { %s837_s18 = smov (%p25_p0, %s24_s18), 0  ;;  %s839_s19 = smov (!%p25_p0, %s27_s19), %s622_s15 }
   0x9   : > { %s66_s22 = sadd.s32 %s618_s14, %s427_s20  ;;  %p83_p1 = scmp.ne.s32.totalorder %s606_s11, %s602_s10 }
   0xa   : > { %p29_p2 = scmp.ge.s32.totalorder %s839_s19, 2  ;;  %p67_p3 = scmp.lt.s32.totalorder %s66_s22, 2 }
   0xb   : > { %p84_p4 = scmp.eq.s32.totalorder %s626_s16, 0  ;;  %p89_p5 = scmp.ne.s32.totalorder %s602_s10, %s598_s9 }
   0xc   : > { %s841_s19 = smov (%p29_p2, %s839_s19), 0  ;;  %s843_s22 = smov (!%p67_p3, %s66_s22), 2 }
   0xd   : > { %s428_s23 = sshll.u32 %s841_s19, 1  ;;  %p701_p6 = por %p84_p4, %p83_p1 }
   0xe   : > { %s70_s25 = sadd.s32 %s428_s23, %s837_s18  ;;  %p90_p7 = scmp.eq.s32.totalorder %s423_s17, 0 }
   0xf   : > { %p71_p8 = scmp.lt.s32.totalorder %s70_s25, 2  ;;  %p462_p10 = scmp.lt.s32.totalorder %s626_s16, 4 }
  0x10   : > { %p706_p9 = por %p90_p7, %p89_p5  ;;  %s157_s27 = sand.u32 1, %s606_s11  }
  0x11   : > { %s845_s25 = smov (!%p71_p8, %s70_s25), 2  ;;  %s452_s28 = sshll.u32 %s843_s22, 9 }
  0x12   : > { %s73_s29 = ssub.s32 %s843_s22, %s845_s25  ;;  %s431_s30 = sshll.u32 %s157_s27, 5 }
  0x13   : > { %p74_p11 = scmp.eq.s32.totalorder %s73_s29, 0  ;;  %s715_s5 = scalar_lea.hbm %s824_s1, %s452_s28 }
  0x14   : > { %s161_s7 = scalar_lea.vmem [#allocation3], %s431_s30  ;;  %p722_p12 = pnand %p462_p10, %p701_p6 }
  0x15   : > { %s718_s6 = scalar_select %p74_p11, %s606_s11, %s76_s21  }
  0x16   : > { %s173_s8 = sshll.u32 %s161_s7, 4  ;;  %s728_s17 = scalar_lea.sflag [#allocation4], %s157_s27  ;;  %s726_s8 = int_to_ptr.vmem [resolvable:$true] %s173_s8 }
  0x17   : > { %s530_s20 = scalar_lea.hbm %s715_s5, 512  ;;  %p532_p0 = pneg %p722_p12 }
  0x18   : > { %p531_p13 = scmp.ne.s32.totalorder %s715_s5, %s530_s20  ;;  %s535_s23 = scalar_lea.hbm %s824_s1, 1536 }
  0x19   : > { %p536_p3 = scmp.lt.u32.totalorder %s715_s5, %s824_s1  ;;  %p537_p4 = scmp.lt.u32.totalorder %s535_s23, %s530_s20 }
  0x1a   : > { %p533_p1 = pnand %p532_p0, %p531_p13  ;;  %p539_p6 = scmp.lt.u32.totalorder %s530_s20, %s715_s5 }
  0x1b   : > { %p538_p5 = por %p537_p4, %p536_p3 }
  0x1c   : > { %p534_p2 = pneg %p533_p1 }
  0x1d   : > { %p540_p7 = por %p539_p6, %p538_p5 }
  0x1f   : > { %p541_p8 = pnand %p540_p7, %p534_p2 }
  0x21   : > { %544 = shalt.err (!%p541_p8)
}
  0x22   : > { %s545_s27 = scalar_lea.vmem %s726_s8, 512  ;;  %s628_s28 = smov [#allocation3]  }
  0x23   : > { %p546_p10 = scmp.ne.s32.totalorder %s726_s8, %s545_s27  ;;  %s550_s29 = sshll.u32 %s628_s28, 4  ;;  %s551_s29 = int_to_ptr.vmem [resolvable:$false] %s550_s29 }
  0x24   : > { %s552_s30 = scalar_lea.vmem %s551_s29, 1024  ;;  %p553_p1 = scmp.lt.s32.totalorder %s726_s8, %s551_s29 }
  0x25   : > { %p548_p11 = pnand %p546_p10, %p532_p0  ;;  %p554_p3 = scmp.lt.s32.totalorder %s552_s30, %s545_s27 }
  0x27   : > { %p549_p13 = pneg %p548_p11  ;;  %p555_p4 = por %p554_p3, %p553_p1 }
  0x29   : > { %p556_p5 = pnand %p555_p4, %p549_p13 }
  0x2b   : > { %559 = shalt.err (!%p556_p5)
}
  0x2c   : > { %s629_s3 = smov 128   ;;  %s630_s4 = smov 8  }
  0x2d   : > { %461 = dma.hbm_to_vmem [thread:$0]  (!%p722_p12), %s715_s5, 512, %s726_s8, %s728_s17, %s629_s3, %s629_s3, %s630_s4  }
  0x2e   : > { %p436_p0 = scmp.ge.s32.totalorder %s626_s16, 1  ;;  %p181_p2 = scmp.lt.s32.totalorder %s626_s16, 5 }
  0x30   : > { %p182_p6 = pnand %p436_p0, %p181_p2 }
  0x31   : > { %s187_s7 = sand.u32 (!%p182_p6), 1, %s602_s10  }
  0x32   : > { %185 = sbr.rel (%p182_p6) target bundleno = 311 (0x137), region = 28  ;;  %s437_s20 = sshll.u32 (!%p182_p6), %s187_s7, 5 }
  0x33   : > { %s188_s21 = scalar_lea.sflag (!%p182_p6), [#allocation4], %s187_s7  ;;  %s759_s22 = scalar_lea.vmem (!%p182_p6), [#allocation3], %s437_s20 }
  0x39   : > { %593 = dma.done.wait (%p706_p9), %s188_s21, 512  }
  0x3a   : > { %595 = vsyncadd (%p706_p9), %s188_s21, 4294966784  ;;  %s438_s5 = sshll.u32 %s614_s13, 1  ;;  %p241_p12 = scmp.lt.s32.totalorder %s614_s13, 1 }
  0x3b   : > { %s768_s8 = sadd.s32 %s610_s12, %s438_s5  ;;  %p443_p8 = scmp.ne.s32.totalorder %s610_s12, 0 }
  0x3c   : > { %p223_p7 = scmp.lt.s32.totalorder %s768_s8, 2  ;;  %s847_s13 = smov (!%p241_p12, %s614_s13), 1  ;;  %vm249_vm0 = vcmask (!%p443_p8), 130048   ;;  %v631_v0 = vmov (!%p443_p8), 0.0  }
  0x3d   : > { %s442_s17 = sshll.u32 %s847_s13, 3  ;;  %250 = vst.msk [vmem:[#allocation2] sm:$0xff] (!%p443_p8), %vm249_vm0, %v631_v0  ;;  %251 = vst.msk [vmem:[#allocation2 + $0x8] sm:$0xff] (!%p443_p8), %vm249_vm0, %v631_v0 }
  0x3e   : > { %s224_s9 = scalar_select %p223_p7, %s768_s8, 2 }
  0x3f   : > { %s776_s26 = scalar_lea.vmem %s825_s2, %s442_s17  ;;  %248 = sbr.rel (%p443_p8) target bundleno = 70 (0x46), region = 36 }
  0x40   : > { %s439_s23 = sshll.u32 %s224_s9, 1 }
  0x41   : > { %p226_p9 = scmp.lt.s32.totalorder %s439_s23, 5 }
  0x43   : > { %s849_s23 = smov (!%p226_p9, %s439_s23), 5 }
  0x44   : > { %s453_s27 = sshll.u32 %s849_s23, 4 }
  0x45   : > { %s230_s30 = scalar_lea.vmem %s823_s0, %s453_s27 }
  0x46 PF: > { %v252_v1 = vld [vmem:[%s230_s30] sm:$0xff]  ;;  %v253_v2 = vld [vmem:[%s230_s30 + $0x8] sm:$0xff]  ;;  %v254_v3 = vld [vmem:[%s230_s30 + $0x10] sm:$0xff]  ;;  %s445_s13 = sshll.u32 %s768_s8, 1 }
  0x47   : > { %v255_v4 = vld [vmem:[%s230_s30 + $0x18] sm:$0xff]  ;;  %v256_v5 = vld [vmem:[%s759_s22] sm:$0xff]  ;;  %s271_s3 = sadd.s32 2, %s445_s13  ;;  %v258_v7 = vld [vmem:[%s759_s22 + $0x10] sm:$0xff] }
  0x48   : > { %v257_v6 = vld [vmem:[%s759_s22 + $0x8] sm:$0xff]  ;;  %v259_v8 = vld [vmem:[%s759_s22 + $0x18] sm:$0xff]  ;;  %v260_v9 = vsub.f32 %v252_v1, %v256_v5  ;;  %v262_v11 = vsub.f32 %v254_v3, %v258_v7  ;;  %p446_p10 = scmp.gt.s32.totalorder %s271_s3, 6 }
  0x49   : > { %v261_v10 = vsub.f32 %v253_v2, %v257_v6  ;;  %v263_v12 = vsub.f32 %v255_v4, %v259_v8  ;;  %vm279_vm1 = vcmask (!%p446_p10), 130048   ;;  %v277_v17 = vld [vmem:[#allocation2] sm:$0xff] (!%p446_p10)  ;;  %v278_v20 = vld [vmem:[#allocation2 + $0x8] sm:$0xff] (!%p446_p10) }
  0x4a   : > { %v264_v13 = vmul.f32 %v260_v9, %v260_v9  ;;  %v266_v15 = vmul.f32 %v262_v11, %v262_v11  ;;  %276 = sbr.rel (%p446_p10) target bundleno = 83 (0x53), region = 40 }
  0x4b   : > { %v265_v14 = vmul.f32 %v261_v10, %v261_v10  ;;  %v267_v16 = vmul.f32 %v263_v12, %v263_v12 }
  0x4c   : > { %v280_v18 = vsel (!%p446_p10), %vm279_vm1, %v264_v13, 0.0  ;;  %v281_v19 = vsel (!%p446_p10), %vm279_vm1, %v266_v15, 0.0 }
  0x4d   : > { %v283_v21 = vsel (!%p446_p10), %vm279_vm1, %v265_v14, 0.0  ;;  %v284_v22 = vsel (!%p446_p10), %vm279_vm1, %v267_v16, 0.0  ;;  %v282_v23 = vadd.f32 (!%p446_p10), %v281_v19, %v280_v18 }
  0x4e   : > { %v285_v24 = vadd.f32 (!%p446_p10), %v284_v22, %v283_v21 }
  0x4f   : > { %v286_v25 = vadd.f32 (!%p446_p10), %v282_v23, %v277_v17 }
  0x50   : > { %v287_v26 = vadd.f32 (!%p446_p10), %v285_v24, %v278_v20 }
  0x51   : > { %288 = vst.msk [vmem:[#allocation2] sm:$0xff] %vm279_vm1, %v286_v25 }
  0x52   : > { %289 = vst.msk [vmem:[#allocation2 + $0x8] sm:$0xff] %vm279_vm1, %v287_v26 }
  0x53 PF: > { %p447_p11 = scmp.le.s32.totalorder %s271_s3, 6 }
  0x54   : > { %v293_v27 = vstv (!%p447_p11), %s445_s13  ;;  %vm303_vm2 = vcmask (!%p447_p11), 130048  }
  0x55   : > { %292 = sbr.rel (%p447_p11) target bundleno = 95 (0x5f), region = 44  ;;  %v294_v28 = vadd.s32 (!%p447_p11), 1, %v293_v27  ;;  %vm295_vm3 = vcmp.lt.s32.totalorder (!%p447_p11), %v293_v27, 6 }
  0x56   : > { %v299_v29 = vsel (!%p447_p11), %vm295_vm3, %v264_v13, 0.0  ;;  %v300_v30 = vsel (!%p447_p11), %vm295_vm3, %v265_v14, 0.0 }
  0x57   : > { %vm296_vm4 = vcmp.lt.s32.totalorder (!%p447_p11), %v294_v28, 6  ;;  %v304_v31 = vsel (!%p447_p11), %vm303_vm2, %v299_v29, 0.0  ;;  %v307_v32 = vsel (!%p447_p11), %vm303_vm2, %v300_v30, 0.0 }
  0x58   : > { %v301_v33 = vsel (!%p447_p11), %vm296_vm4, %v266_v15, 0.0  ;;  %v302_v34 = vsel (!%p447_p11), %vm296_vm4, %v267_v16, 0.0 }
  0x59   : > { %v305_v36 = vsel (!%p447_p11), %vm303_vm2, %v301_v33, 0.0  ;;  %v298_v37 = vld [vmem:[#allocation2 + $0x8] sm:$0xff] (!%p447_p11)  ;;  %v308_v38 = vsel (!%p447_p11), %vm303_vm2, %v302_v34, 0.0 }
  0x5a   : > { %v297_v35 = vld [vmem:[#allocation2] sm:$0xff] (!%p447_p11)  ;;  %v306_v39 = vadd.f32 (!%p447_p11), %v305_v36, %v304_v31  ;;  %v309_v40 = vadd.f32 (!%p447_p11), %v308_v38, %v307_v32 }
  0x5c   : > { %v310_v41 = vadd.f32 %v306_v39, %v297_v35  ;;  %v311_v42 = vadd.f32 %v309_v40, %v298_v37 }
  0x5e   : > { %312 = vst.msk [vmem:[#allocation2] sm:$0xff] %vm303_vm2, %v310_v41  ;;  %313 = vst.msk [vmem:[#allocation2 + $0x8] sm:$0xff] %vm303_vm2, %v311_v42 }
  0x5f PF: > { %p448_p13 = scmp.ne.s32.totalorder %s610_s12, 1 }
  0x60   : > { %vm320_vm5 = vcmask (!%p448_p13), 130048  }
  0x61   : > { %317 = sbr.rel (%p448_p13) target bundleno = 311 (0x137), region = 48 }
  0x65   : > { %v318_v43 = vld [vmem:[#allocation2] sm:$0xff] (!%p448_p13)  ;;  %v319_v44 = vld [vmem:[#allocation2 + $0x8] sm:$0xff] (!%p448_p13) }
  0x66   : > { %v321_v45 = vsel (!%p448_p13), %vm320_vm5, %v318_v43, 0.0  ;;  %v322_v46 = vsel (!%p448_p13), %vm320_vm5, %v319_v44, 0.0 }
  0x67   : > { %v323_v47 = vadd.f32 (!%p448_p13), %v322_v46, %v321_v45 }
  0x69   : > { %324 = vadd.xlane.f32.xlu0 %v323_v47 }
  0xf6   : > { %v325_v48 = vpop.xlane.xlu0 %324 }
  0xf7   : > { %v326_v49 = vrot.slane %v325_v48, 4 }
  0xf9   : > { %v327_v50 = vadd.f32 %v326_v49, %v325_v48 }
  0xfb   : > { %v328_v51 = vrot.slane %v327_v50, 2 }
  0xfd   : > { %v329_v52 = vadd.f32 %v328_v51, %v327_v50 }
  0xff   : > { %v330_v53 = vrot.slane %v329_v52, 1 }
 0x101   : > { %v331_v54 = vadd.f32 %v330_v53, %v329_v52 }
 0x103   : > { %454 = vpush %v331_v54 }
 0x134   : > { %s455_s4 = spop %454 }
 0x135   : > { %v333_v55 = vstv %s455_s4 }
 0x136   : > { %334 = vst [vmem:[%s776_s26] sm:$0xff] %v333_v55 }
 0x137 PF: > { %s15_s16 = sadd.s32 1, %s626_s16   ;;  %s829_s9 = smov %s602_s10 }
 0x138   : > { %p12_p1 = scmp.ge.s32.totalorder %s15_s16, 6   ;;  %s830_s10 = smov %s606_s11 }
 0x139   : > { %s831_s11 = smov %s718_s6  ;;  %s832_s12 = smov %s618_s14 }
 0x13a   : > { %s833_s13 = smov %s622_s15  ;;  %s834_s14 = smov %s837_s18 }
 0x13b   : > { %s835_s15 = smov %s841_s19  ;;  %14 = sbr.rel (!%p12_p1) target bundleno = 5 (0x5), region = 87 }
 0x142   :  { %354 = vsyncpa [#allocation4], 1 }
 0x143   :  { %356 = vsyncpa [#allocation4 + $0x1], 1 }

</bundles_post_ra>
